<compile_context>
chip_gen: v6e
topology: v6e:2x2x1
jax: 0.10.0
libtpu: 0.0.40
codegen_flags: <defaults>
</compile_context>

<pallas_src>
import jax
import jax.numpy as jnp
from jax.experimental import pallas as pl
from jax.experimental.pallas import tpu as pltpu


def _round_up(n, m):
    return pl.cdiv(n, m) * m


def _lora_kernel(*refs):
    # refs = (x_0..x_{n-1}, A, B, o_0..o_{n-1}); n known at trace time.
    n = (len(refs) - 2) // 2
    x_refs = refs[:n]
    a_ref, b_ref = refs[n], refs[n + 1]
    o_refs = refs[n + 2:]

    a = a_ref[...]
    b = b_ref[...]
    for x_ref, o_ref in zip(x_refs, o_refs):
        x = x_ref[...]
        # Two low-rank MXU passes; f32 accumulation.
        xa = jnp.dot(x, a, preferred_element_type=jnp.float32)
        upd = jnp.dot(xa.astype(b.dtype), b, preferred_element_type=jnp.float32)
        o_ref[...] = (x.astype(jnp.float32) + upd).astype(o_ref.dtype)


def _pick_row_tile(rows, d_pad, itemsize, n_streams, sublane):
    # Per grid step the pipeline holds: 2 (double-buffer) x (n in + n out)
    # X-sized tiles, plus ~f32 temporaries for the stream being processed.
    # Budget ~32 MiB for those so we stay well inside the scoped VMEM limit
    # on v5e / v6e / v7x even with A/B resident.
    total_budget = 32 * 1024 * 1024
    denom = (4 * n_streams + 4) * d_pad * itemsize
    rt = total_budget // max(denom, 1)
    rt = max(sublane, min(int(rt), 2048))
    rt = min(rt, int(_round_up(rows, sublane)))
    rt = max(sublane, (rt // sublane) * sublane)
    return int(rt)


def _lora_adapt_multi(xs, A, B, *, row_tile=None):
    """Compute [x + x @ (A @ B) for x in xs] in a single Pallas TPU kernel.

    All xs must share the same shape (Q/K/V case) — A/B are loaded once and
    stay resident across the row-tile grid. xs: (..., d), A: (d, rank),
    B: (rank, d).
    """
    n = len(xs)
    orig_shapes = [x.shape for x in xs]
    d = orig_shapes[0][-1]
    dtype = xs[0].dtype
    itemsize = jnp.dtype(dtype).itemsize

    xs2 = [x.reshape(-1, d) for x in xs]
    rows = xs2[0].shape[0]

    # --- lane-dense feature axis (multiple of 128); zero padding is exact ---
    d_pad = int(_round_up(d, 128))
    if d_pad != d:
        xs2 = [jnp.pad(x, ((0, 0), (0, d_pad - d))) for x in xs2]
        A = jnp.pad(A, ((0, d_pad - d), (0, 0)))
        B = jnp.pad(B, ((0, 0), (0, d_pad - d)))
    rank = A.shape[-1]

    # --- row tile: sublane-aligned, VMEM-budgeted ---
    sublane = max(8, 32 // itemsize)          # 8 for f32, 16 for bf16
    if row_tile is None:
        row_tile = _pick_row_tile(rows, d_pad, itemsize, n, sublane)
    row_tile = min(row_tile, int(_round_up(rows, sublane)))
    row_tile = max(sublane, (row_tile // sublane) * sublane)

    rows_pad = int(_round_up(rows, row_tile))
    if rows_pad != rows:
        xs2 = [jnp.pad(x, ((0, rows_pad - rows), (0, 0))) for x in xs2]

    grid = (rows_pad // row_tile,)

    flops = 4 * n * rows_pad * d_pad * rank   # two (rows x d x rank) matmuls / stream
    bytes_accessed = (2 * n * rows_pad * d_pad * itemsize
                      + (A.size + B.size) * jnp.dtype(A.dtype).itemsize)

    x_spec = pl.BlockSpec((row_tile, d_pad), lambda i: (i, 0))
    # A/B are grid-invariant (index_map always (0,0)): the pipeline keeps them
    # resident and does not re-DMA between steps.
    a_spec = pl.BlockSpec((d_pad, rank), lambda i: (0, 0))
    b_spec = pl.BlockSpec((rank, d_pad), lambda i: (0, 0))

    outs = pl.pallas_call(
        _lora_kernel,
        out_shape=tuple(jax.ShapeDtypeStruct((rows_pad, d_pad), dtype)
                        for _ in range(n)),
        grid_spec=pltpu.PrefetchScalarGridSpec(
            num_scalar_prefetch=0,
            grid=grid,
            in_specs=[x_spec] * n + [a_spec, b_spec],
            out_specs=tuple(pl.BlockSpec((row_tile, d_pad), lambda i: (i, 0))
                            for _ in range(n)),
        ),
        compiler_params=pltpu.CompilerParams(
            dimension_semantics=("parallel",),
            vmem_limit_bytes=48 * 1024 * 1024),
        cost_estimate=pl.CostEstimate(
            flops=flops, transcendentals=0, bytes_accessed=bytes_accessed),
    )(*xs2, A, B)

    results = []
    for out, shp in zip(outs, orig_shapes):
        results.append(out[:rows, :d].reshape(shp))
    return results


def lora_adapt(x, A, B):
    """Single-tensor convenience wrapper: x + x @ (A @ B)."""
    return _lora_adapt_multi([x], A, B)[0]


def adapt_attention(Q, K, V, A, B):
    # Q, K, V share the same A/B: one fused pallas_call (3 inputs / 3 outputs,
    # no HBM concatenate or re-slice, A/B loaded once).
    if Q.shape == K.shape == V.shape:
        Qn, Kn, Vn = _lora_adapt_multi([Q, K, V], A, B)
    else:
        Qn, Kn, Vn = (lora_adapt(Q, A, B), lora_adapt(K, A, B),
                      lora_adapt(V, A, B))
    return Qn, Kn, Vn


def adapt_ffn(W1, C, D):
    return lora_adapt(W1, C, D)


if __name__ == "__main__":
    key = jax.random.PRNGKey(0)
    k_a, k_b, k_c, k_d, k_q, k_k, k_v, k_w = jax.random.split(key, 8)

    d, rank = 32, 4
    batch, seq = 2, 8

    # Parameters (torch.randn equivalents), deterministic.
    A = jax.random.normal(k_a, (d, rank), dtype=jnp.float32)
    B = jax.random.normal(k_b, (rank, d), dtype=jnp.float32)
    C = jax.random.normal(k_c, (d, rank), dtype=jnp.float32)
    D = jax.random.normal(k_d, (rank, d), dtype=jnp.float32)

    # Inputs.
    Q = jax.random.normal(k_q, (batch, seq, d), dtype=jnp.float32)
    K = jax.random.normal(k_k, (batch, seq, d), dtype=jnp.float32)
    V = jax.random.normal(k_v, (batch, seq, d), dtype=jnp.float32)
    W1 = jax.random.normal(k_w, (batch, seq, d), dtype=jnp.float32)

    Qn, Kn, Vn = adapt_attention(Q, K, V, A, B)
    W1n = adapt_ffn(W1, C, D)
    jax.block_until_ready((Qn, Kn, Vn, W1n))

    # Reference check in plain JAX (same math as the PyTorch module).
    ref_q = Q + Q @ (A @ B)
    ref_k = K + K @ (A @ B)
    ref_v = V + V @ (A @ B)
    ref_w = W1 + W1 @ (C @ D)
    assert jnp.allclose(Qn, ref_q, atol=1e-4, rtol=1e-4)
    assert jnp.allclose(Kn, ref_k, atol=1e-4, rtol=1e-4)
    assert jnp.allclose(Vn, ref_v, atol=1e-4, rtol=1e-4)
    assert jnp.allclose(W1n, ref_w, atol=1e-4, rtol=1e-4)

    # TODO(synk): the module's forward() is `pass` and self.model is never
    # invoked; only adapt_attention/adapt_ffn carry compute, so those are what
    # is kernelized here.

    print("KERNEL_OK")
</pallas_src>

<mosaic_0001>
module attributes {stable_mosaic.version = 11 : i64} {
  func.func @_lora_kernel(%arg0: i32, %arg1: memref<16x128xf32, #tpu.memory_space<vmem>>, %arg2: memref<16x128xf32, #tpu.memory_space<vmem>>, %arg3: memref<16x128xf32, #tpu.memory_space<vmem>>, %arg4: memref<128x4xf32, #tpu.memory_space<vmem>>, %arg5: memref<4x128xf32, #tpu.memory_space<vmem>>, %arg6: memref<16x128xf32, #tpu.memory_space<vmem>>, %arg7: memref<16x128xf32, #tpu.memory_space<vmem>>, %arg8: memref<16x128xf32, #tpu.memory_space<vmem>>) attributes {dimension_semantics = [#tpu.dimension_semantics<parallel>], iteration_bounds = array<i64: 1>, scalar_prefetch = 0 : i64, scratch_operands = 0 : i64, tpu.core_type = #tpu.core_type<tc>, window_params = [{transform_indices = @transform_0, window_bounds = array<i64: 16, 128>}, {transform_indices = @transform_1, window_bounds = array<i64: 16, 128>}, {transform_indices = @transform_2, window_bounds = array<i64: 16, 128>}, {pipeline_mode = #tpu.pipeline_mode<synchronous>, transform_indices = @transform_3, window_bounds = array<i64: 128, 4>}, {pipeline_mode = #tpu.pipeline_mode<synchronous>, transform_indices = @transform_4, window_bounds = array<i64: 4, 128>}, {transform_indices = @transform_5, window_bounds = array<i64: 16, 128>}, {transform_indices = @transform_6, window_bounds = array<i64: 16, 128>}, {transform_indices = @transform_7, window_bounds = array<i64: 16, 128>}]} {
    %c0 = arith.constant 0 : index
    %c0_0 = arith.constant 0 : index
    %0 = vector.load %arg4[%c0, %c0_0] : memref<128x4xf32, #tpu.memory_space<vmem>>, vector<128x4xf32>
    %c0_1 = arith.constant 0 : index
    %c0_2 = arith.constant 0 : index
    %1 = vector.load %arg5[%c0_1, %c0_2] : memref<4x128xf32, #tpu.memory_space<vmem>>, vector<4x128xf32>
    %c0_3 = arith.constant 0 : index
    %c0_4 = arith.constant 0 : index
    %2 = vector.load %arg1[%c0_3, %c0_4] : memref<16x128xf32, #tpu.memory_space<vmem>>, vector<16x128xf32>
    %cst = arith.constant dense<0.000000e+00> : vector<16x4xf32>
    %3 = tpu.matmul %2, %0, %cst {dimension_numbers = #tpu.dot_dimension_numbers<[1], [0], [0], [1], [0, 0, 1, 1], [], []>} : vector<16x128xf32>, vector<128x4xf32>, vector<16x4xf32> -> vector<16x4xf32>
    %cst_5 = arith.constant dense<0.000000e+00> : vector<16x128xf32>
    %4 = tpu.matmul %3, %1, %cst_5 {dimension_numbers = #tpu.dot_dimension_numbers<[1], [0], [0], [1], [0, 0, 1, 1], [], []>} : vector<16x4xf32>, vector<4x128xf32>, vector<16x128xf32> -> vector<16x128xf32>
    %5 = arith.addf %2, %4 : vector<16x128xf32>
    %c0_6 = arith.constant 0 : index
    %c0_7 = arith.constant 0 : index
    %6 = vector.load %arg6[%c0_6, %c0_7] : memref<16x128xf32, #tpu.memory_space<vmem>>, vector<16x128xf32>
    tpu.vector_store %arg6[%c0_6, %c0_7], %5 {strides = array<i32>} : memref<16x128xf32, #tpu.memory_space<vmem>>, vector<16x128xf32>,
    %c0_8 = arith.constant 0 : index
    %c0_9 = arith.constant 0 : index
    %7 = vector.load %arg2[%c0_8, %c0_9] : memref<16x128xf32, #tpu.memory_space<vmem>>, vector<16x128xf32>
    %cst_10 = arith.constant dense<0.000000e+00> : vector<16x4xf32>
    %8 = tpu.matmul %7, %0, %cst_10 {dimension_numbers = #tpu.dot_dimension_numbers<[1], [0], [0], [1], [0, 0, 1, 1], [], []>} : vector<16x128xf32>, vector<128x4xf32>, vector<16x4xf32> -> vector<16x4xf32>
    %cst_11 = arith.constant dense<0.000000e+00> : vector<16x128xf32>
    %9 = tpu.matmul %8, %1, %cst_11 {dimension_numbers = #tpu.dot_dimension_numbers<[1], [0], [0], [1], [0, 0, 1, 1], [], []>} : vector<16x4xf32>, vector<4x128xf32>, vector<16x128xf32> -> vector<16x128xf32>
    %10 = arith.addf %7, %9 : vector<16x128xf32>
    %c0_12 = arith.constant 0 : index
    %c0_13 = arith.constant 0 : index
    %11 = vector.load %arg7[%c0_12, %c0_13] : memref<16x128xf32, #tpu.memory_space<vmem>>, vector<16x128xf32>
    tpu.vector_store %arg7[%c0_12, %c0_13], %10 {strides = array<i32>} : memref<16x128xf32, #tpu.memory_space<vmem>>, vector<16x128xf32>,
    %c0_14 = arith.constant 0 : index
    %c0_15 = arith.constant 0 : index
    %12 = vector.load %arg3[%c0_14, %c0_15] : memref<16x128xf32, #tpu.memory_space<vmem>>, vector<16x128xf32>
    %cst_16 = arith.constant dense<0.000000e+00> : vector<16x4xf32>
    %13 = tpu.matmul %12, %0, %cst_16 {dimension_numbers = #tpu.dot_dimension_numbers<[1], [0], [0], [1], [0, 0, 1, 1], [], []>} : vector<16x128xf32>, vector<128x4xf32>, vector<16x4xf32> -> vector<16x4xf32>
    %cst_17 = arith.constant dense<0.000000e+00> : vector<16x128xf32>
    %14 = tpu.matmul %13, %1, %cst_17 {dimension_numbers = #tpu.dot_dimension_numbers<[1], [0], [0], [1], [0, 0, 1, 1], [], []>} : vector<16x4xf32>, vector<4x128xf32>, vector<16x128xf32> -> vector<16x128xf32>
    %15 = arith.addf %12, %14 : vector<16x128xf32>
    %c0_18 = arith.constant 0 : index
    %c0_19 = arith.constant 0 : index
    %16 = vector.load %arg8[%c0_18, %c0_19] : memref<16x128xf32, #tpu.memory_space<vmem>>, vector<16x128xf32>
    tpu.vector_store %arg8[%c0_18, %c0_19], %15 {strides = array<i32>} : memref<16x128xf32, #tpu.memory_space<vmem>>, vector<16x128xf32>,
    return
  }
  func.func @transform_0(%arg0: i32) -> (i32, i32) {
    %c0_i32 = arith.constant 0 : i32
    %c0_i32_0 = arith.constant 0 : i32
    return %arg0, %c0_i32 : i32, i32
  }
  func.func @transform_1(%arg0: i32) -> (i32, i32) {
    %c0_i32 = arith.constant 0 : i32
    %c0_i32_0 = arith.constant 0 : i32
    return %arg0, %c0_i32 : i32, i32
  }
  func.func @transform_2(%arg0: i32) -> (i32, i32) {
    %c0_i32 = arith.constant 0 : i32
    %c0_i32_0 = arith.constant 0 : i32
    return %arg0, %c0_i32 : i32, i32
  }
  func.func @transform_3(%arg0: i32) -> (i32, i32) {
    %c0_i32 = arith.constant 0 : i32
    %c0_i32_0 = arith.constant 0 : i32
    %c0_i32_1 = arith.constant 0 : i32
    return %c0_i32, %c0_i32_0 : i32, i32
  }
  func.func @transform_4(%arg0: i32) -> (i32, i32) {
    %c0_i32 = arith.constant 0 : i32
    %c0_i32_0 = arith.constant 0 : i32
    %c0_i32_1 = arith.constant 0 : i32
    return %c0_i32, %c0_i32_0 : i32, i32
  }
  func.func @transform_5(%arg0: i32) -> (i32, i32) {
    %c0_i32 = arith.constant 0 : i32
    %c0_i32_0 = arith.constant 0 : i32
    return %arg0, %c0_i32 : i32, i32
  }
  func.func @transform_6(%arg0: i32) -> (i32, i32) {
    %c0_i32 = arith.constant 0 : i32
    %c0_i32_0 = arith.constant 0 : i32
    return %arg0, %c0_i32 : i32, i32
  }
  func.func @transform_7(%arg0: i32) -> (i32, i32) {
    %c0_i32 = arith.constant 0 : i32
    %c0_i32_0 = arith.constant 0 : i32
    return %arg0, %c0_i32 : i32, i32
  }
}

</mosaic_0001>

<bundles_post_ra>
// kernel: tpu_custom_call.1
= control target key start
LH: loop header
LB: loop body
LE: loop exit
PB: predicated region body
PF: predicated region fallthrough
CT: control target
= control target key end

     0   :  { %13 = vsyncpa [#allocation3], 0  ;;  %s1085_s0 = inlined_call_operand.vmem [shape: f32[16,128], index: 0, kind: input, shape index: {}]   ;;  %s1086_s1 = inlined_call_operand.vmem [shape: f32[16,128], index: 1, kind: input, shape index: {}]   ;;  %s1087_s2 = inlined_call_operand.vmem [shape: f32[16,128], index: 2, kind: input, shape index: {}]   ;;  %s1088_s3 = inlined_call_operand.vmem [shape: f32[128,4], index: 3, kind: input, shape index: {}]   ;;  %s1089_s4 = inlined_call_operand.vmem [shape: f32[4,128], index: 4, kind: input, shape index: {}]   ;;  %s1090_s5 = inlined_call_operand.hbm [shape: f32[16,128], index: 5, kind: output, shape index: {0}]   ;;  %s1091_s6 = inlined_call_operand.hbm [shape: f32[16,128], index: 6, kind: output, shape index: {1}]   ;;  %s1092_s7 = inlined_call_operand.hbm [shape: f32[16,128], index: 7, kind: output, shape index: {2}]  }
   0x1   :  { %v889_v0 = vld [vmem:[%s1088_s3 + $0x78] sm:$0xff]  ;;  %v894_v1 = vld [vmem:[%s1088_s3 + $0x70] sm:$0xff]  ;;  %v903_v2 = vld [vmem:[%s1088_s3 + $0x68] sm:$0xff] }
   0x2   :  { %652 = vmatprep.subr.mxu0 %v889_v0  ;;  %692 = vmatprep.subr.mxu1 %v889_v0  ;;  %v912_v3 = vld [vmem:[%s1088_s3 + $0x60] sm:$0xff]  ;;  %v921_v4 = vld [vmem:[%s1088_s3 + $0x58] sm:$0xff] }
   0x3   :  { %653 = vmatpush3.msra.mxu0 %v889_v0  ;;  %693 = vmatpush3.msra.mxu1 %v889_v0 }
   0x4   :  { %654 = vmatprep.subr.mxu0 %v894_v1  ;;  %694 = vmatprep.subr.mxu1 %v894_v1 }
   0x5   :  { %655 = vmatpush3.msra.mxu0 %v894_v1  ;;  %695 = vmatpush3.msra.mxu1 %v894_v1 }
   0x6   :  { %656 = vmatprep.subr.mxu0 %v903_v2  ;;  %696 = vmatprep.subr.mxu1 %v903_v2 }
   0x7   :  { %657 = vmatpush3.msra.mxu0 %v903_v2  ;;  %697 = vmatpush3.msra.mxu1 %v903_v2 }
   0x8   :  { %658 = vmatprep.subr.mxu0 %v912_v3  ;;  %698 = vmatprep.subr.mxu1 %v912_v3 }
   0x9   :  { %14 = vsyncpa [#allocation5], 0  ;;  %659 = vmatpush3.msra.mxu0 %v912_v3  ;;  %699 = vmatpush3.msra.mxu1 %v912_v3  ;;  %v930_v5 = vld [vmem:[%s1088_s3 + $0x50] sm:$0xff]  ;;  %v939_v6 = vld [vmem:[%s1088_s3 + $0x48] sm:$0xff]  ;;  %vm126_vm0 = vcmask 1043456   ;;  %vm119_vm1 = vcmask 31744  }
   0xa   :  { %660 = vmatprep.subr.mxu0 %v921_v4  ;;  %700 = vmatprep.subr.mxu1 %v921_v4  ;;  %v948_v7 = vld [vmem:[%s1088_s3 + $0x40] sm:$0xff]  ;;  %v957_v8 = vld [vmem:[%s1088_s3 + $0x38] sm:$0xff]  ;;  %v966_v9 = vld [vmem:[%s1088_s3 + $0x30] sm:$0xff]  ;;  %s842_s21 = smov [#allocation4]  }
   0xb   :  { %661 = vmatpush3.msra.mxu0 %v921_v4  ;;  %701 = vmatpush3.msra.mxu1 %v921_v4  ;;  %v975_v10 = vld [vmem:[%s1088_s3 + $0x28] sm:$0xff]  ;;  %v29_v11 = vld [vmem:[%s1088_s3 + $0x20] sm:$0xff]  ;;  %v28_v12 = vld [vmem:[%s1088_s3 + $0x18] sm:$0xff]  ;;  %s550_s22 = sshll.u32 %s842_s21, 4  ;;  %s551_s22 = int_to_ptr.vmem [resolvable:$true] %s550_s22 }
   0xc   :  { %662 = vmatprep.subr.mxu0 %v930_v5  ;;  %702 = vmatprep.subr.mxu1 %v930_v5  ;;  %v27_v13 = vld [vmem:[%s1088_s3 + $0x10] sm:$0xff]  ;;  %v26_v14 = vld [vmem:[%s1088_s3 + $0x8] sm:$0xff]  ;;  %v25_v15 = vld [vmem:[%s1088_s3] sm:$0xff] }
   0xd   :  { %663 = vmatpush3.msra.mxu0 %v930_v5  ;;  %703 = vmatpush3.msra.mxu1 %v930_v5  ;;  %v1003_v16 = vld [vmem:[%s1085_s0] sm:$0xff]  ;;  %v1013_v18 = vld [vmem:[%s1085_s0 + $0x8] sm:$0xff] }
   0xe   :  { %664 = vmatprep.subr.mxu0 %v939_v6  ;;  %704 = vmatprep.subr.mxu1 %v939_v6  ;;  %v1008_v17 = vld [vmem:[%s1086_s1] sm:$0xff]  ;;  %v1018_v19 = vld [vmem:[%s1086_s1 + $0x8] sm:$0xff] }
   0xf   :  { %665 = vmatpush3.msra.mxu0 %v939_v6  ;;  %705 = vmatpush3.msra.mxu1 %v939_v6  ;;  %v1024_v20 = vld [vmem:[%s1087_s2] sm:$0xff]  ;;  %v1055_v21 = vld [vmem:[%s1087_s2 + $0x8] sm:$0xff]  ;;  %s841_s2 = smov [#allocation2]  }
  0x10   :  { %666 = vmatprep.subr.mxu0 %v948_v7  ;;  %706 = vmatprep.subr.mxu1 %v948_v7  ;;  %v41_v22 = vld [vmem:[%s1089_s4] sm:$0xf]  ;;  %s538_s4 = sshll.u32 %s841_s2, 4  ;;  %s539_s4 = int_to_ptr.vmem [resolvable:$true] %s538_s4 }
  0x11   :  { %667 = vmatpush3.msra.mxu0 %v948_v7  ;;  %707 = vmatpush3.msra.mxu1 %v948_v7  ;;  %s777_s23 = scalar_lea.vmem %s539_s4, 256  ;;  %p782_p1 = scmp.lt.s32.totalorder %s539_s4, %s539_s4 }
  0x12   :  { %668 = vmatprep.subr.mxu0 %v957_v8  ;;  %708 = vmatprep.subr.mxu1 %v957_v8  ;;  %p778_p0 = scmp.ne.s32.totalorder %s539_s4, %s777_s23  ;;  %p783_p2 = scmp.lt.s32.totalorder %s777_s23, %s777_s23 }
  0x13   :  { %669 = vmatpush3.msra.mxu0 %v957_v8  ;;  %709 = vmatpush3.msra.mxu1 %v957_v8 }
  0x14   :  { %670 = vmatprep.subr.mxu0 %v966_v9  ;;  %710 = vmatprep.subr.mxu1 %v966_v9  ;;  %p784_p3 = por %p783_p2, %p782_p1 }
  0x15   :  { %671 = vmatpush3.msra.mxu0 %v966_v9  ;;  %711 = vmatpush3.msra.mxu1 %v966_v9 }
  0x16   :  { %672 = vmatprep.subr.mxu0 %v975_v10  ;;  %712 = vmatprep.subr.mxu1 %v975_v10  ;;  %p785_p4 = pnand %p784_p3, %p778_p0 }
  0x17   :  { %673 = vmatpush3.msra.mxu0 %v975_v10  ;;  %713 = vmatpush3.msra.mxu1 %v975_v10 }
  0x18   :  { %674 = vmatprep.subr.mxu0 %v29_v11  ;;  %714 = vmatprep.subr.mxu1 %v29_v11 }
  0x19   :  { %675 = vmatpush3.msra.mxu0 %v29_v11  ;;  %715 = vmatpush3.msra.mxu1 %v29_v11 }
  0x1a   :  { %676 = vmatprep.subr.mxu0 %v28_v12  ;;  %716 = vmatprep.subr.mxu1 %v28_v12 }
  0x1b   :  { %677 = vmatpush3.msra.mxu0 %v28_v12  ;;  %717 = vmatpush3.msra.mxu1 %v28_v12 }
  0x1c   :  { %678 = vmatprep.subr.mxu0 %v27_v13  ;;  %718 = vmatprep.subr.mxu1 %v27_v13 }
  0x1d   :  { %679 = vmatpush3.msra.mxu0 %v27_v13  ;;  %719 = vmatpush3.msra.mxu1 %v27_v13 }
  0x1e   :  { %680 = vmatprep.subr.mxu0 %v26_v14  ;;  %720 = vmatprep.subr.mxu1 %v26_v14 }
  0x1f   :  { %681 = vmatpush3.msra.mxu0 %v26_v14  ;;  %721 = vmatpush3.msra.mxu1 %v26_v14 }
  0x20   :  { %682 = vmatprep.subr.mxu0 %v25_v15  ;;  %722 = vmatprep.subr.mxu1 %v25_v15 }
  0x21   :  { %683 = vmatpush3.msra.mxu0 %v25_v15  ;;  %684 = vmatprep.mubr.f32.mxu0 %v1003_v16 }
  0x22   :  { %723 = vmatpush3.msra.mxu1 %v25_v15  ;;  %724 = vmatprep.mubr.f32.mxu1 %v1008_v17 }
  0x23   :  { %685 = vmatmul.mubr.f32.vlgmr.msra.gmra.mxu0 %v1013_v18  ;;  %725 = vmatmul.mubr.f32.vlgmr.msra.gmra.mxu1 %v1018_v19 }
  0x24   :  { %732 = vmatprep.subr.mxu1 %v889_v0  ;;  %764 = vmatprep.mubr.f32.mxu1 %v1024_v20 }
  0x25   :  { %733 = vmatpush3.msra.mxu1 %v889_v0  ;;  %687 = vmatprep.subr.msk.mxu0 %vm126_vm0, %v41_v22 }
  0x26   :  { %734 = vmatprep.subr.mxu1 %v894_v1  ;;  %688 = vmatpush3.msk.msra.mxu0 %vm126_vm0, %v41_v22 }
  0x27   :  { %735 = vmatpush3.msra.mxu1 %v894_v1  ;;  %727 = vmatprep.subr.msk.mxu0 %vm126_vm0, %v41_v22 }
  0x28   :  { %736 = vmatprep.subr.mxu1 %v903_v2 }
  0x29   :  { %737 = vmatpush3.msra.mxu1 %v903_v2 }
  0x2a   :  { %738 = vmatprep.subr.mxu1 %v912_v3 }
  0x2b   :  { %739 = vmatpush3.msra.mxu1 %v912_v3 }
  0x2c   :  { %740 = vmatprep.subr.mxu1 %v921_v4 }
  0x2d   :  { %741 = vmatpush3.msra.mxu1 %v921_v4 }
  0x2e   :  { %742 = vmatprep.subr.mxu1 %v930_v5 }
  0x2f   :  { %743 = vmatpush3.msra.mxu1 %v930_v5 }
  0x30   :  { %744 = vmatprep.subr.mxu1 %v939_v6 }
  0x31   :  { %745 = vmatpush3.msra.mxu1 %v939_v6 }
  0x32   :  { %746 = vmatprep.subr.mxu1 %v948_v7 }
  0x33   :  { %747 = vmatpush3.msra.mxu1 %v948_v7 }
  0x34   :  { %748 = vmatprep.subr.mxu1 %v957_v8 }
  0x35   :  { %749 = vmatpush3.msra.mxu1 %v957_v8 }
  0x36   :  { %750 = vmatprep.subr.mxu1 %v966_v9 }
  0x37   :  { %751 = vmatpush3.msra.mxu1 %v966_v9 }
  0x38   :  { %752 = vmatprep.subr.mxu1 %v975_v10 }
  0x39   :  { %753 = vmatpush3.msra.mxu1 %v975_v10 }
  0x3a   :  { %754 = vmatprep.subr.mxu1 %v29_v11 }
  0x3b   :  { %755 = vmatpush3.msra.mxu1 %v29_v11 }
  0x3c   :  { %756 = vmatprep.subr.mxu1 %v28_v12 }
  0x3d   :  { %757 = vmatpush3.msra.mxu1 %v28_v12 }
  0x3e   :  { %758 = vmatprep.subr.mxu1 %v27_v13 }
  0x3f   :  { %759 = vmatpush3.msra.mxu1 %v27_v13 }
  0x40   :  { %760 = vmatprep.subr.mxu1 %v26_v14 }
  0x41   :  { %761 = vmatpush3.msra.mxu1 %v26_v14 }
  0x42   :  { %762 = vmatprep.subr.mxu1 %v25_v15 }
  0x43   :  { %763 = vmatpush3.msra.mxu1 %v25_v15 }
  0x44   :  { %765 = vmatmul.mubr.f32.vlgmr.msra.gmra.mxu1 %v1055_v21 }
  0xe3   :  { %v686_v23 = vpop.f32.mrf.mxu0  ;;  %v726_v24 = vpop.f32.mrf.mxu1 }
  0xe5   :  { %v110_v25 = vpop.f32.mrf.mxu0  ;;  %v277_v26 = vpop.f32.mrf.mxu1 }
  0xe6   :  { %689 = vmatprep.mubr.msk.f32.mxu0 %vm119_vm1, %v110_v25 }
  0xe7   :  { %690 = vmatmul.mubr.msk.f32.vlgmr.msra.gmra.mxu0 %vm119_vm1, %v686_v23 }
  0xe8   :  { %729 = vmatprep.mubr.msk.f32.mxu0 %vm119_vm1, %v277_v26  ;;  %728 = vmatpush3.msk.msra.mxu0 %vm126_vm0, %v41_v22 }
  0xe9   :  { %767 = vmatprep.subr.msk.mxu0 %vm126_vm0, %v41_v22 }
  0xeb   :  { %730 = vmatmul.mubr.msk.f32.vlgmr.msra.gmra.mxu0 %vm119_vm1, %v726_v24 }
  0xec   :  { %768 = vmatpush3.msk.msra.mxu0 %vm126_vm0, %v41_v22 }
 0x104   :  { %v766_v27 = vpop.f32.mrf.mxu1 }
 0x106   :  { %v439_v28 = vpop.f32.mrf.mxu1 }
 0x107   :  { %769 = vmatprep.mubr.msk.f32.mxu0 %vm119_vm1, %v439_v28 }
 0x108   :  { %770 = vmatmul.mubr.msk.f32.vlgmr.msra.gmra.mxu0 %vm119_vm1, %v766_v27 }
 0x1a7   :  { %v691_v29 = vpop.f32.mrf.mxu0 }
 0x1a8   :  { %v206_v30 = vadd.f32 %v691_v29, %v1013_v18 }
 0x1a9   :  { %v196_v31 = vpop.f32.mrf.mxu0 }
 0x1aa   :  { %208 = vst [vmem:[#allocation2 + $0x8] sm:$0xff] %v206_v30  ;;  %v205_v32 = vadd.f32 %v196_v31, %v1003_v16 }
 0x1ab   :  { %v731_v33 = vpop.f32.mrf.mxu0 }
 0x1ac   :  { %207 = vst [vmem:[#allocation2] sm:$0xff] %v205_v32  ;;  %v368_v34 = vadd.f32 %v731_v33, %v1018_v19 }
 0x1ad   :  { %v358_v35 = vpop.f32.mrf.mxu0 }
 0x1ae   :  { %788 = shalt.err (!%p785_p4)
}
 0x1af   :  { %s843_s24 = smov 128   ;;  %s844_s25 = smov 8   ;;  %370 = vst [vmem:[#allocation4 + $0x8] sm:$0xff] %v368_v34  ;;  %v367_v36 = vadd.f32 %v358_v35, %v1008_v17 }
 0x1b0   :  { %544 = dma.vmem_to_hbm [thread:$0]  %s539_s4, 256, %s1090_s5, [#allocation3], %s843_s24, %s843_s24, %s844_s25  }
 0x1b1   :  { %369 = vst [vmem:[#allocation4] sm:$0xff] %v367_v36  ;;  %s797_s28 = scalar_lea.vmem %s551_s22, 256  ;;  %p802_p6 = scmp.lt.s32.totalorder %s551_s22, %s551_s22 }
 0x1b2   :  { %p798_p5 = scmp.ne.s32.totalorder %s551_s22, %s797_s28  ;;  %p803_p7 = scmp.lt.s32.totalorder %s797_s28, %s797_s28 }
 0x1b4   :  { %p804_p8 = por %p803_p7, %p802_p6 }
 0x1b6   :  { %p805_p9 = pnand %p804_p8, %p798_p5 }
 0x1b8   :  { %808 = shalt.err (!%p805_p9)
}
 0x1b9   :  { %556 = dma.vmem_to_hbm [thread:$0]  %s551_s22, 256, %s1091_s6, [#allocation5], %s843_s24, %s843_s24, %s844_s25  }
 0x1ba   :  { %s845_s5 = smov [#allocation6]  }
 0x1bb   :  { %s562_s8 = sshll.u32 %s845_s5, 4  ;;  %s563_s8 = int_to_ptr.vmem [resolvable:$true] %s562_s8 }
 0x1bc   :  { %s817_s9 = scalar_lea.vmem %s563_s8, 256  ;;  %p822_p11 = scmp.lt.s32.totalorder %s563_s8, %s563_s8 }
 0x1bd   :  { %p818_p10 = scmp.ne.s32.totalorder %s563_s8, %s817_s9  ;;  %p823_p12 = scmp.lt.s32.totalorder %s817_s9, %s817_s9 }
 0x1bf   :  { %p824_p13 = por %p823_p12, %p822_p11 }
 0x1c1   :  { %p825_p0 = pnand %p824_p13, %p818_p10 }
 0x1c8   :  { %v771_v37 = vpop.f32.mrf.mxu0 }
 0x1c9   :  { %v530_v38 = vadd.f32 %v771_v37, %v1055_v21 }
 0x1ca   :  { %v520_v39 = vpop.f32.mrf.mxu0 }
 0x1cb   :  { %532 = vst [vmem:[#allocation6 + $0x8] sm:$0xff] %v530_v38  ;;  %v529_v40 = vadd.f32 %v520_v39, %v1024_v20 }
 0x1cd   :  { %531 = vst [vmem:[#allocation6] sm:$0xff] %v529_v40 }
 0x1ce   :  { %828 = shalt.err (!%p825_p0)
}
 0x1cf   :  { %568 = dma.vmem_to_hbm [thread:$0]  %s563_s8, 256, %s1092_s7, [#allocation5], %s843_s24, %s843_s24, %s844_s25  }
 0x1d0   :  { %837 = dma.done.wait [#allocation3], 256  }
 0x1d1   :  { %838 = vsyncadd [#allocation3], 4294967040 }
 0x1d2   :  { %839 = dma.done.wait [#allocation5], 512  }
 0x1d3   :  { %840 = vsyncadd [#allocation5], 4294966784 }
 0x1d4   :  { %578 = vsyncpa [#allocation3], 1 }
 0x1d5   :  { %579 = vsyncpa [#allocation5], 1 }

</bundles_post_ra>
